<compile_context>
chip_gen: v5e
topology: v5e:2x2
jax: 0.10.0
libtpu: 0.0.40
codegen_flags: <defaults>
</compile_context>

<pallas_src>
import functools

import jax
import jax.numpy as jnp
from jax.experimental import pallas as pl
from jax.experimental.pallas import tpu as pltpu


def _patchnce_kernel(q_ref, k_ref, loss_ref, m_sc, se_sc, ssum_sc, lpos_sc, *,
                     nce_T, lb_smooth, npatches, tile_q, tile_k, use_bf16_matmul):
    """One grid step: all B bmm batches, TQ query rows vs. TK key rows."""
    qi = pl.program_id(0)
    ki = pl.program_id(1)
    inv_T = 1.0 / nce_T

    @pl.when(ki == 0)
    def _init():
        m_sc[...] = jnp.full_like(m_sc, -jnp.inf)
        se_sc[...] = jnp.zeros_like(se_sc)
        ssum_sc[...] = jnp.zeros_like(ssum_sc)
        lpos_sc[...] = jnp.zeros_like(lpos_sc)

    # Fold 1/T into q once (weak scalar -> stays in the native dtype): both l_pos
    # and the negative scores come out pre-scaled.
    q_s = q_ref[...] * inv_T                     # (B, TQ, D)
    k = k_ref[...]                               # (B, TK, D)
    if use_bf16_matmul:
        q_s = q_s.astype(jnp.bfloat16)
        k = k.astype(jnp.bfloat16)

    # Scores: contract over D on both operands (no explicit k transpose), batched
    # over B, f32 accumulation on the MXU.
    s = jax.lax.dot_general(
        q_s, k,
        dimension_numbers=(((2,), (2,)), ((0,), (0,))),
        preferred_element_type=jnp.float32)      # (B, TQ, TK)

    # Per-batch diagonal of the (P, P) score matrix that lands in this tile.
    # (1, TQ, TK) iotas broadcast over B (JAX does not CSE broadcast_in_dim).
    row = qi * tile_q + jax.lax.broadcasted_iota(jnp.int32, (1, tile_q, tile_k), 1)
    col = ki * tile_k + jax.lax.broadcasted_iota(jnp.int32, (1, tile_q, tile_k), 2)
    is_diag = row == col                         # (1, TQ, TK)

    # l_pos = <q_i, k_i> / T, read off the (un-masked) diagonal of s.
    lpos_sc[...] += jnp.sum(jnp.where(is_diag, s, 0.0), axis=-1, keepdims=True)

    # masked_fill_(diagonal, -10.0) happens before the /T in the reference, so the
    # fill value is scaled too.
    s = jnp.where(is_diag, jnp.float32(-10.0 * inv_T), s)

    # Online log-sum-exp over the negatives.
    m_prev = m_sc[...]                                               # (B, TQ, 1)
    m_new = jnp.maximum(m_prev, jnp.max(s, axis=-1, keepdims=True))  # (B, TQ, 1)
    p = jnp.exp(s - m_new)                                           # (B, TQ, TK)
    se_sc[...] = se_sc[...] * jnp.exp(m_prev - m_new) + jnp.sum(p, axis=-1, keepdims=True)
    ssum_sc[...] += jnp.sum(s, axis=-1, keepdims=True)
    m_sc[...] = m_new

    @pl.when(ki == pl.num_programs(1) - 1)
    def _finalize():
        l_pos = lpos_sc[...]                                         # (B, TQ, 1)
        m_neg = m_sc[...]
        m_tot = jnp.maximum(m_neg, l_pos)
        sumexp = se_sc[...] * jnp.exp(m_neg - m_tot) + jnp.exp(l_pos - m_tot)
        lse = m_tot + jnp.log(sumexp)                                # (B, TQ, 1)

        num_classes = npatches + 1                                   # 1 pos + P negs
        logp0 = l_pos - lse
        sum_logp = (l_pos + ssum_sc[...]) - float(num_classes) * lse

        # Label-smoothed CE with target class 0 (labels all zero, none ignored).
        # Matches LabelSmoothSoftmaxCEV1: scatter_ OVERWRITES the target weight
        # with (1 - lb_smooth) (not CrossEntropyLoss's (1-eps)+eps/C).
        lb_pos = 1.0 - lb_smooth
        lb_neg = lb_smooth / num_classes
        loss = -(lb_pos * logp0 + lb_neg * (sum_logp - logp0))       # (B, TQ, 1)
        loss_ref[...] = loss[..., 0]                                 # lane-dense (B, TQ)


def _rup(x, m):
    return (x + m - 1) // m * m


def _vmem_estimate(B, tq, tk, D, esz):
    """Per-step VMEM bytes actually materialized by the kernel (padded layouts)."""
    d_pad = _rup(D, 128)
    q_blk = 2 * B * _rup(tq, 8) * d_pad * esz            # q block, double-buffered
    k_blk = 2 * B * _rup(tk, 8) * d_pad * esz            # k block, double-buffered
    o_blk = 2 * _rup(B, 8) * _rup(tq, 128) * 4           # output block
    s_tls = 3 * B * _rup(tq, 8) * _rup(tk, 128) * 4      # scores + exp + masked temps
    iota = 2 * _rup(tq, 8) * _rup(tk, 128) * 4           # (1, TQ, TK) iota temps
    accs = 4 * B * _rup(tq, 8) * 128 * 4                 # (B, TQ, 1) f32 scratch x4 (lane-padded)
    return q_blk + k_blk + o_blk + s_tls + iota + accs + (2 << 20)


def _tile_candidates(P, align):
    """Multiples of `align` that divide P, plus P itself, descending."""
    cands = {P}
    c = align
    while c < P:
        if P % c == 0:
            cands.add(c)
        c += align
    return sorted(cands, reverse=True)


def _pick_tiles(B, P, D, esz, budget):
    """Largest (TQ, TK) whose VMEM footprint fits `budget`.

    TQ is 128-aligned (lane-dense output block) unless it must be the full P;
    TK is 8-aligned.  When P splits into >=2 128-aligned query tiles, the full-P
    query tile is excluded so the grid has >=2 parallel steps (v7x megacore).
    """
    tq_cands = _tile_candidates(P, 128)
    tk_cands = _tile_candidates(P, 8)
    split = [c for c in tq_cands if c < P]
    if split:
        tq_cands = split

    best = None
    for tq in tq_cands:
        for tk in tk_cands:
            est = _vmem_estimate(B, tq, tk, D, esz)
            if est <= budget:
                key = (tq * tk, tq)   # biggest score tile; tie-break: less k HBM traffic
                if best is None or key > best[0]:
                    best = (key, (tq, tk, est))
    if best is not None:
        return best[1]
    # Nothing fits the target budget: smallest tiles, honest estimate (never clamp below).
    tq, tk = min(tq_cands), min(tk_cands)
    return tq, tk, _vmem_estimate(B, tq, tk, D, esz)


def patchnce_loss_with_label_smooth(feat_q, feat_k, *, batch_size, nce_T=0.07,
                                    nce_includes_all_negatives_from_minibatch=False,
                                    lb_smooth=0.1, use_bf16_matmul=False,
                                    tile_q=None, tile_k=None):
    # feat_k.detach() in the reference; forward-only here.
    # TODO(synk): if this is ever differentiated, add a custom VJP so gradients match
    # PyTorch (stop_gradient only covers the tracing-level detach).
    feat_k = jax.lax.stop_gradient(feat_k)

    N, D = feat_q.shape
    B = 1 if nce_includes_all_negatives_from_minibatch else batch_size
    assert N % B == 0
    P = N // B

    # No dtype up-cast in the wrapper: DMA native dtype, accumulate in f32 in-kernel.
    q = feat_q.reshape(B, P, D)
    k = feat_k.reshape(B, P, D)
    esz = jnp.dtype(feat_q.dtype).itemsize

    # VMEM budget per generation: ~75% of physical (48 MiB on v7x, ~96 MiB on v5e/v6e).
    try:
        capacity = int(pltpu.get_tpu_info().vmem_capacity_bytes)
    except Exception:
        capacity = 64 << 20   # conservative fallback (v7x per-core VMEM)
    budget = (capacity * 3) // 4

    auto_tq, auto_tk, _ = _pick_tiles(B, P, D, esz, budget)
    TQ = int(tile_q) if tile_q is not None else auto_tq
    TK = int(tile_k) if tile_k is not None else auto_tk
    assert P % TQ == 0 and P % TK == 0
    assert TQ == P or TQ % 128 == 0, "query tile must be 128-aligned or the full P"
    assert TK == P or TK % 8 == 0, "key tile must be 8-aligned or the full P"
    n_q, n_k = P // TQ, P // TK

    est = _vmem_estimate(B, TQ, TK, D, esz)
    vmem_limit = int(min(capacity, max(est, 32 << 20)))
    if vmem_limit < est:                 # never clamp below the estimate
        vmem_limit = int(est)

    kernel = functools.partial(
        _patchnce_kernel, nce_T=float(nce_T), lb_smooth=float(lb_smooth),
        npatches=P, tile_q=TQ, tile_k=TK,
        use_bf16_matmul=bool(use_bf16_matmul) and feat_q.dtype == jnp.float32)

    out = pl.pallas_call(
        kernel,
        out_shape=jax.ShapeDtypeStruct((B, P), jnp.float32),
        grid_spec=pltpu.PrefetchScalarGridSpec(
            num_scalar_prefetch=0,
            grid=(n_q, n_k),                      # reduction (key) axis last
            in_specs=[
                pl.BlockSpec((B, TQ, D), lambda qi, ki: (0, qi, 0)),
                pl.BlockSpec((B, TK, D), lambda qi, ki: (0, ki, 0)),
            ],
            out_specs=pl.BlockSpec((B, TQ), lambda qi, ki: (0, qi)),
            scratch_shapes=[pltpu.VMEM((B, TQ, 1), jnp.float32)] * 4,  # m, sumexp, sum_s, l_pos
        ),
        compiler_params=pltpu.CompilerParams(
            dimension_semantics=("parallel", "arbitrary"),
            vmem_limit_bytes=vmem_limit),
    )(q, k)

    # reduction='reduction' in the reference => no reduction: per-sample (N,) loss.
    return out.reshape(N)


def _reference_loss(feat_q, feat_k, *, batch_size, nce_T=0.07,
                    nce_includes_all_negatives_from_minibatch=False, lb_smooth=0.1):
    """Pure-JAX replica of the PyTorch forward, for validation."""
    feat_q = feat_q.astype(jnp.float32)
    feat_k = feat_k.astype(jnp.float32)
    N, D = feat_q.shape
    l_pos = jnp.sum(feat_q * feat_k, axis=-1, keepdims=True)              # (N, 1)
    B = 1 if nce_includes_all_negatives_from_minibatch else batch_size
    P = N // B
    q = feat_q.reshape(B, P, D)
    k = feat_k.reshape(B, P, D)
    l_neg = jnp.einsum('bpd,bqd->bpq', q, k)
    eye = jnp.eye(P, dtype=bool)[None]
    l_neg = jnp.where(eye, -10.0, l_neg).reshape(N, P)
    out = jnp.concatenate([l_pos, l_neg], axis=1) / nce_T                 # (N, P+1)
    C = P + 1
    lb_pos, lb_neg = 1.0 - lb_smooth, lb_smooth / C
    one_hot = jnp.full((N, C), lb_neg).at[:, 0].set(lb_pos)               # labels all 0
    logs = jax.nn.log_softmax(out, axis=1)
    return -jnp.sum(logs * one_hot, axis=1)


if __name__ == "__main__":
    # --- primary small-shape test (opt.batch_size=2, npatches=8, dim=32) ---
    key = jax.random.PRNGKey(0)
    kq, kk = jax.random.split(key)
    batch_size, npatches, dim = 2, 8, 32
    N = batch_size * npatches
    feat_q = jax.random.normal(kq, (N, dim), dtype=jnp.float32)
    feat_k = jax.random.normal(kk, (N, dim), dtype=jnp.float32)

    loss = patchnce_loss_with_label_smooth(
        feat_q, feat_k, batch_size=batch_size, nce_T=0.07,
        nce_includes_all_negatives_from_minibatch=False, lb_smooth=0.1)
    loss = jax.block_until_ready(loss)
    ref = _reference_loss(feat_q, feat_k, batch_size=batch_size)
    assert loss.shape == (N,)
    assert jnp.allclose(loss, ref, rtol=1e-4, atol=1e-4), (loss, ref)

    # --- multi-tile test: exercises TQ < P and the online-softmax key loop ---
    bs2, np2, d2 = 2, 256, 64
    N2 = bs2 * np2
    kq2, kk2 = jax.random.split(jax.random.PRNGKey(1))
    fq2 = jax.random.normal(kq2, (N2, d2), dtype=jnp.float32)
    fk2 = jax.random.normal(kk2, (N2, d2), dtype=jnp.float32)
    loss2 = jax.block_until_ready(patchnce_loss_with_label_smooth(
        fq2, fk2, batch_size=bs2, tile_q=128, tile_k=64))
    ref2 = _reference_loss(fq2, fk2, batch_size=bs2)
    assert loss2.shape == (N2,)
    assert jnp.allclose(loss2, ref2, rtol=1e-4, atol=1e-4)

    # --- optional bf16 MXU feed: compiles/runs; numerics intentionally looser ---
    loss3 = jax.block_until_ready(patchnce_loss_with_label_smooth(
        fq2, fk2, batch_size=bs2, use_bf16_matmul=True))
    assert loss3.shape == (N2,)
    assert bool(jnp.all(jnp.isfinite(loss3)))

    print("KERNEL_OK")
</pallas_src>

<mosaic_0001>
module attributes {stable_mosaic.version = 11 : i64} {
  func.func @_patchnce_kernel(%arg0: i32, %arg1: i32, %arg2: memref<2x8x32xf32, #tpu.memory_space<vmem>>, %arg3: memref<2x8x32xf32, #tpu.memory_space<vmem>>, %arg4: memref<2x8xf32, #tpu.memory_space<vmem>>, %arg5: memref<2x8x1xf32, #tpu.memory_space<vmem>>, %arg6: memref<2x8x1xf32, #tpu.memory_space<vmem>>, %arg7: memref<2x8x1xf32, #tpu.memory_space<vmem>>, %arg8: memref<2x8x1xf32, #tpu.memory_space<vmem>>) attributes {dimension_semantics = [#tpu.dimension_semantics<parallel>, #tpu.dimension_semantics<arbitrary>], iteration_bounds = array<i64: 1, 1>, scalar_prefetch = 0 : i64, scratch_operands = 4 : i64, tpu.core_type = #tpu.core_type<tc>, window_params = [{transform_indices = @transform_0, window_bounds = array<i64: 2, 8, 32>}, {transform_indices = @transform_1, window_bounds = array<i64: 2, 8, 32>}, {transform_indices = @transform_2, window_bounds = array<i64: 2, 8>}]} {
    %c0_i32 = arith.constant 0 : i32
    %0 = arith.cmpi eq, %arg1, %c0_i32 : i32
    %1 = arith.extui %0 : i1 to i32
    %c0_i32_0 = arith.constant 0 : i32
    %2 = arith.cmpi ne, %1, %c0_i32_0 : i32
    scf.if %2 {
      %cst_40 = arith.constant 0xFF800000 : f32
      %54 = vector.broadcast %cst_40 : f32 to vector<2x8x1xf32>
      %c0_41 = arith.constant 0 : index
      %c0_42 = arith.constant 0 : index
      %c0_43 = arith.constant 0 : index
      %55 = vector.load %arg5[%c0_41, %c0_42, %c0_43] : memref<2x8x1xf32, #tpu.memory_space<vmem>>, vector<2x8x1xf32>
      tpu.vector_store %arg5[%c0_41, %c0_42, %c0_43], %54 {strides = array<i32>} : memref<2x8x1xf32, #tpu.memory_space<vmem>>, vector<2x8x1xf32>,
      %cst_44 = arith.constant 0.000000e+00 : f32
      %56 = vector.broadcast %cst_44 : f32 to vector<2x8x1xf32>
      %c0_45 = arith.constant 0 : index
      %c0_46 = arith.constant 0 : index
      %c0_47 = arith.constant 0 : index
      %57 = vector.load %arg6[%c0_45, %c0_46, %c0_47] : memref<2x8x1xf32, #tpu.memory_space<vmem>>, vector<2x8x1xf32>
      tpu.vector_store %arg6[%c0_45, %c0_46, %c0_47], %56 {strides = array<i32>} : memref<2x8x1xf32, #tpu.memory_space<vmem>>, vector<2x8x1xf32>,
      %cst_48 = arith.constant 0.000000e+00 : f32
      %58 = vector.broadcast %cst_48 : f32 to vector<2x8x1xf32>
      %c0_49 = arith.constant 0 : index
      %c0_50 = arith.constant 0 : index
      %c0_51 = arith.constant 0 : index
      %59 = vector.load %arg7[%c0_49, %c0_50, %c0_51] : memref<2x8x1xf32, #tpu.memory_space<vmem>>, vector<2x8x1xf32>
      tpu.vector_store %arg7[%c0_49, %c0_50, %c0_51], %58 {strides = array<i32>} : memref<2x8x1xf32, #tpu.memory_space<vmem>>, vector<2x8x1xf32>,
      %cst_52 = arith.constant 0.000000e+00 : f32
      %60 = vector.broadcast %cst_52 : f32 to vector<2x8x1xf32>
      %c0_53 = arith.constant 0 : index
      %c0_54 = arith.constant 0 : index
      %c0_55 = arith.constant 0 : index
      %61 = vector.load %arg8[%c0_53, %c0_54, %c0_55] : memref<2x8x1xf32, #tpu.memory_space<vmem>>, vector<2x8x1xf32>
      tpu.vector_store %arg8[%c0_53, %c0_54, %c0_55], %60 {strides = array<i32>} : memref<2x8x1xf32, #tpu.memory_space<vmem>>, vector<2x8x1xf32>,
    } else {
    }
    %c0 = arith.constant 0 : index
    %c0_1 = arith.constant 0 : index
    %c0_2 = arith.constant 0 : index
    %3 = vector.load %arg2[%c0, %c0_1, %c0_2] : memref<2x8x32xf32, #tpu.memory_space<vmem>>, vector<2x8x32xf32>
    %cst = arith.constant 14.2857141 : f32
    %4 = vector.broadcast %cst : f32 to vector<2x8x32xf32>
    %5 = arith.mulf %3, %4 : vector<2x8x32xf32>
    %c0_3 = arith.constant 0 : index
    %c0_4 = arith.constant 0 : index
    %c0_5 = arith.constant 0 : index
    %6 = vector.load %arg3[%c0_3, %c0_4, %c0_5] : memref<2x8x32xf32, #tpu.memory_space<vmem>>, vector<2x8x32xf32>
    %cst_6 = arith.constant dense<0.000000e+00> : vector<2x8x8xf32>
    %7 = tpu.matmul %5, %6, %cst_6 {dimension_numbers = #tpu.dot_dimension_numbers<[2], [2], [1], [1], [0, 0, 0, 1, 1, 1], [0], [0]>} : vector<2x8x32xf32>, vector<2x8x32xf32>, vector<2x8x8xf32> -> vector<2x8x8xf32>
    %c8_i32 = arith.constant 8 : i32
    %8 = arith.muli %arg0, %c8_i32 : i32
    %9 = tpu.iota {dimensions = array<i32: 1>} : vector<1x8x8xi32>
    %10 = vector.broadcast %8 : i32 to vector<1x8x8xi32>
    %11 = arith.addi %10, %9 : vector<1x8x8xi32>
    %c8_i32_7 = arith.constant 8 : i32
    %12 = arith.muli %arg1, %c8_i32_7 : i32
    %13 = tpu.iota {dimensions = array<i32: 2>} : vector<1x8x8xi32>
    %14 = vector.broadcast %12 : i32 to vector<1x8x8xi32>
    %15 = arith.addi %14, %13 : vector<1x8x8xi32>
    %16 = arith.cmpi eq, %11, %15 : vector<1x8x8xi32>
    %c0_8 = arith.constant 0 : index
    %c0_9 = arith.constant 0 : index
    %c0_10 = arith.constant 0 : index
    %17 = vector.load %arg8[%c0_8, %c0_9, %c0_10] : memref<2x8x1xf32, #tpu.memory_space<vmem>>, vector<2x8x1xf32>
    %cst_11 = arith.constant 0.000000e+00 : f32
    %18 = vector.shape_cast %16 : vector<1x8x8xi1> to vector<1x8x8xi1>
    %19 = vector.broadcast %18 : vector<1x8x8xi1> to vector<2x8x8xi1>
    %20 = vector.broadcast %cst_11 : f32 to vector<2x8x8xf32>
    %21 = arith.select %19, %7, %20 : vector<2x8x8xi1>, vector<2x8x8xf32>
    %cst_12 = arith.constant dense<0.000000e+00> : vector<2x8xf32>
    %22 = vector.multi_reduction <add>, %21, %cst_12 [2] : vector<2x8x8xf32> to vector<2x8xf32>
    %23 = vector.shape_cast %22 : vector<2x8xf32> to vector<2x8x1xf32>
    %24 = arith.addf %17, %23 : vector<2x8x1xf32>
    %c0_13 = arith.constant 0 : index
    %c0_14 = arith.constant 0 : index
    %c0_15 = arith.constant 0 : index
    %25 = vector.load %arg8[%c0_13, %c0_14, %c0_15] : memref<2x8x1xf32, #tpu.memory_space<vmem>>, vector<2x8x1xf32>
    tpu.vector_store %arg8[%c0_13, %c0_14, %c0_15], %24 {strides = array<i32>} : memref<2x8x1xf32, #tpu.memory_space<vmem>>, vector<2x8x1xf32>,
    %cst_16 = arith.constant -142.857147 : f32
    %26 = vector.shape_cast %16 : vector<1x8x8xi1> to vector<1x8x8xi1>
    %27 = vector.broadcast %26 : vector<1x8x8xi1> to vector<2x8x8xi1>
    %28 = vector.broadcast %cst_16 : f32 to vector<2x8x8xf32>
    %29 = arith.select %27, %28, %7 : vector<2x8x8xi1>, vector<2x8x8xf32>
    %c0_17 = arith.constant 0 : index
    %c0_18 = arith.constant 0 : index
    %c0_19 = arith.constant 0 : index
    %30 = vector.load %arg5[%c0_17, %c0_18, %c0_19] : memref<2x8x1xf32, #tpu.memory_space<vmem>>, vector<2x8x1xf32>
    %cst_20 = arith.constant dense<0xFF800000> : vector<2x8xf32>
    %31 = vector.multi_reduction <maximumf>, %29, %cst_20 [2] : vector<2x8x8xf32> to vector<2x8xf32>
    %32 = vector.shape_cast %31 : vector<2x8xf32> to vector<2x8x1xf32>
    %33 = arith.maximumf %30, %32 : vector<2x8x1xf32>
    %34 = vector.broadcast %33 : vector<2x8x1xf32> to vector<2x8x8xf32>
    %35 = arith.subf %29, %34 : vector<2x8x8xf32>
    %36 = math.exp %35 : vector<2x8x8xf32>
    %c0_21 = arith.constant 0 : index
    %c0_22 = arith.constant 0 : index
    %c0_23 = arith.constant 0 : index
    %37 = vector.load %arg6[%c0_21, %c0_22, %c0_23] : memref<2x8x1xf32, #tpu.memory_space<vmem>>, vector<2x8x1xf32>
    %38 = arith.subf %30, %33 : vector<2x8x1xf32>
    %39 = math.exp %38 : vector<2x8x1xf32>
    %40 = arith.mulf %37, %39 : vector<2x8x1xf32>
    %cst_24 = arith.constant dense<0.000000e+00> : vector<2x8xf32>
    %41 = vector.multi_reduction <add>, %36, %cst_24 [2] : vector<2x8x8xf32> to vector<2x8xf32>
    %42 = vector.shape_cast %41 : vector<2x8xf32> to vector<2x8x1xf32>
    %43 = arith.addf %40, %42 : vector<2x8x1xf32>
    %c0_25 = arith.constant 0 : index
    %c0_26 = arith.constant 0 : index
    %c0_27 = arith.constant 0 : index
    %44 = vector.load %arg6[%c0_25, %c0_26, %c0_27] : memref<2x8x1xf32, #tpu.memory_space<vmem>>, vector<2x8x1xf32>
    tpu.vector_store %arg6[%c0_25, %c0_26, %c0_27], %43 {strides = array<i32>} : memref<2x8x1xf32, #tpu.memory_space<vmem>>, vector<2x8x1xf32>,
    %c0_28 = arith.constant 0 : index
    %c0_29 = arith.constant 0 : index
    %c0_30 = arith.constant 0 : index
    %45 = vector.load %arg7[%c0_28, %c0_29, %c0_30] : memref<2x8x1xf32, #tpu.memory_space<vmem>>, vector<2x8x1xf32>
    %cst_31 = arith.constant dense<0.000000e+00> : vector<2x8xf32>
    %46 = vector.multi_reduction <add>, %29, %cst_31 [2] : vector<2x8x8xf32> to vector<2x8xf32>
    %47 = vector.shape_cast %46 : vector<2x8xf32> to vector<2x8x1xf32>
    %48 = arith.addf %45, %47 : vector<2x8x1xf32>
    %c0_32 = arith.constant 0 : index
    %c0_33 = arith.constant 0 : index
    %c0_34 = arith.constant 0 : index
    %49 = vector.load %arg7[%c0_32, %c0_33, %c0_34] : memref<2x8x1xf32, #tpu.memory_space<vmem>>, vector<2x8x1xf32>
    tpu.vector_store %arg7[%c0_32, %c0_33, %c0_34], %48 {strides = array<i32>} : memref<2x8x1xf32, #tpu.memory_space<vmem>>, vector<2x8x1xf32>,
    %c0_35 = arith.constant 0 : index
    %c0_36 = arith.constant 0 : index
    %c0_37 = arith.constant 0 : index
    %50 = vector.load %arg5[%c0_35, %c0_36, %c0_37] : memref<2x8x1xf32, #tpu.memory_space<vmem>>, vector<2x8x1xf32>
    tpu.vector_store %arg5[%c0_35, %c0_36, %c0_37], %33 {strides = array<i32>} : memref<2x8x1xf32, #tpu.memory_space<vmem>>, vector<2x8x1xf32>,
    %c0_i32_38 = arith.constant 0 : i32
    %51 = arith.cmpi eq, %arg1, %c0_i32_38 : i32
    %52 = arith.extui %51 : i1 to i32
    %c0_i32_39 = arith.constant 0 : i32
    %53 = arith.cmpi ne, %52, %c0_i32_39 : i32
    scf.if %53 {
      %c0_40 = arith.constant 0 : index
      %c0_41 = arith.constant 0 : index
      %c0_42 = arith.constant 0 : index
      %54 = vector.load %arg8[%c0_40, %c0_41, %c0_42] : memref<2x8x1xf32, #tpu.memory_space<vmem>>, vector<2x8x1xf32>
      %c0_43 = arith.constant 0 : index
      %c0_44 = arith.constant 0 : index
      %c0_45 = arith.constant 0 : index
      %55 = vector.load %arg5[%c0_43, %c0_44, %c0_45] : memref<2x8x1xf32, #tpu.memory_space<vmem>>, vector<2x8x1xf32>
      %56 = arith.maximumf %55, %54 : vector<2x8x1xf32>
      %c0_46 = arith.constant 0 : index
      %c0_47 = arith.constant 0 : index
      %c0_48 = arith.constant 0 : index
      %57 = vector.load %arg6[%c0_46, %c0_47, %c0_48] : memref<2x8x1xf32, #tpu.memory_space<vmem>>, vector<2x8x1xf32>
      %58 = arith.subf %55, %56 : vector<2x8x1xf32>
      %59 = math.exp %58 : vector<2x8x1xf32>
      %60 = arith.mulf %57, %59 : vector<2x8x1xf32>
      %61 = arith.subf %54, %56 : vector<2x8x1xf32>
      %62 = math.exp %61 : vector<2x8x1xf32>
      %63 = arith.addf %60, %62 : vector<2x8x1xf32>
      %64 = math.log %63 : vector<2x8x1xf32>
      %65 = arith.addf %56, %64 : vector<2x8x1xf32>
      %66 = arith.subf %54, %65 : vector<2x8x1xf32>
      %c0_49 = arith.constant 0 : index
      %c0_50 = arith.constant 0 : index
      %c0_51 = arith.constant 0 : index
      %67 = vector.load %arg7[%c0_49, %c0_50, %c0_51] : memref<2x8x1xf32, #tpu.memory_space<vmem>>, vector<2x8x1xf32>
      %68 = arith.addf %54, %67 : vector<2x8x1xf32>
      %cst_52 = arith.constant 9.000000e+00 : f32
      %69 = vector.broadcast %cst_52 : f32 to vector<2x8x1xf32>
      %70 = arith.mulf %69, %65 : vector<2x8x1xf32>
      %71 = arith.subf %68, %70 : vector<2x8x1xf32>
      %cst_53 = arith.constant 0.899999976 : f32
      %72 = vector.broadcast %cst_53 : f32 to vector<2x8x1xf32>
      %73 = arith.mulf %72, %66 : vector<2x8x1xf32>
      %74 = arith.subf %71, %66 : vector<2x8x1xf32>
      %cst_54 = arith.constant 0.0111111114 : f32
      %75 = vector.broadcast %cst_54 : f32 to vector<2x8x1xf32>
      %76 = arith.mulf %75, %74 : vector<2x8x1xf32>
      %77 = arith.addf %73, %76 : vector<2x8x1xf32>
      %cst_55 = arith.constant 0.000000e+00 : f32
      %78 = vector.broadcast %cst_55 : f32 to vector<2x8x1xf32>
      %79 = arith.subf %78, %77 : vector<2x8x1xf32>
      %80 = vector.shape_cast %79 : vector<2x8x1xf32> to vector<2x8xf32>
      %c0_56 = arith.constant 0 : index
      %c0_57 = arith.constant 0 : index
      %81 = vector.load %arg4[%c0_56, %c0_57] : memref<2x8xf32, #tpu.memory_space<vmem>>, vector<2x8xf32>
      tpu.vector_store %arg4[%c0_56, %c0_57], %80 {strides = array<i32>} : memref<2x8xf32, #tpu.memory_space<vmem>>, vector<2x8xf32>,
    } else {
    }
    return
  }
  func.func @transform_0(%arg0: i32, %arg1: i32) -> (i32, i32, i32) {
    %c0_i32 = arith.constant 0 : i32
    %c0_i32_0 = arith.constant 0 : i32
    %c0_i32_1 = arith.constant 0 : i32
    return %c0_i32, %arg0, %c0_i32_0 : i32, i32, i32
  }
  func.func @transform_1(%arg0: i32, %arg1: i32) -> (i32, i32, i32) {
    %c0_i32 = arith.constant 0 : i32
    %c0_i32_0 = arith.constant 0 : i32
    %c0_i32_1 = arith.constant 0 : i32
    return %c0_i32, %arg1, %c0_i32_0 : i32, i32, i32
  }
  func.func @transform_2(%arg0: i32, %arg1: i32) -> (i32, i32) {
    %c0_i32 = arith.constant 0 : i32
    %c0_i32_0 = arith.constant 0 : i32
    return %c0_i32, %arg0 : i32, i32
  }
}

</mosaic_0001>

<bundles_post_ra>
// kernel: tpu_custom_call.1
= control target key start
LH: loop header
LB: loop body
LE: loop exit
PB: predicated region body
PF: predicated region fallthrough
CT: control target
= control target key end

     0   :  { %7 = vsyncpa [#allocation7], 0  ;;  %s467_s0 = inlined_call_operand.hbm [shape: f32[2,8,32], index: 0, kind: input, shape index: {}]   ;;  %s468_s1 = inlined_call_operand.hbm [shape: f32[2,8,32], index: 1, kind: input, shape index: {}]   ;;  %s469_s2 = inlined_call_operand.hbm [shape: f32[2,8], index: 2, kind: output, shape index: {}]  }
   0x1   :  { %8 = vsyncpa [#allocation10], 0 }
   0x2   :  { %9 = vsyncpa [#allocation8], 0  ;;  %s14_s11 = sshll.u32 %s467_s0, 4  ;;  %s406_s12 = smov [#allocation6]   ;;  %s15_s11 = int_to_ptr.hbm [resolvable:$true] %s14_s11 }
   0x3   :  { %s16_s13 = sshll.u32 %s406_s12, 4  ;;  %s27_s16 = sshll.u32 %s468_s1, 4  ;;  %s17_s13 = int_to_ptr.vmem [resolvable:$true] %s16_s13  ;;  %s28_s16 = int_to_ptr.hbm [resolvable:$true] %s27_s16 }
   0x4   :  { %s407_s17 = smov 128   ;;  %s408_s18 = smov 8  }
   0x5   :  { %22 = dma.hbm_to_vmem [thread:$0]  %s15_s11, 256, %s17_s13, [#allocation7], %s407_s17, %s407_s17, %s408_s18  }
   0x6   :  { %s409_s19 = smov [#allocation9]  }
   0x7   :  { %s29_s20 = sshll.u32 %s409_s19, 4  ;;  %s30_s20 = int_to_ptr.vmem [resolvable:$true] %s29_s20 }
   0x8   :  { %35 = dma.hbm_to_vmem [thread:$0]  %s28_s16, 256, %s30_s20, [#allocation10], %s407_s17, %s407_s17, %s408_s18  }
   0x9   :  { %400 = dma.done.wait [#allocation7], 256  }
   0xa   :  { %401 = vsyncadd [#allocation7], 4294967040 }
   0xb   :  { %402 = dma.done.wait [#allocation10], 256  }
   0xc   :  { %403 = vsyncadd [#allocation10], 4294967040  ;;  %vm63_vm0 = vcmask 261120   ;;  %v61_v0 = vld [vmem:[#allocation9] sm:$0xff]  ;;  %v57_v1 = vld [vmem:[#allocation6] sm:$0xff]  ;;  %vm48_vm1 = vcmask 7168   ;;  %v117_v7 = vlaneseq }
   0xd   :  { %v62_v2 = vld [vmem:[#allocation9 + $0x8] sm:$0xff]  ;;  %293 = vmatpush.xpose.msk.msra.mxu0 %vm63_vm0, %v61_v0  ;;  %v59_v3 = vmul.f32 14.285714, %v57_v1  ;;  %v58_v4 = vld [vmem:[#allocation6 + $0x8] sm:$0xff]  ;;  %v410_v6 = vmov -inf   ;;  %vm133_vm3 = vcmask 64512  }
   0xe   :  { %295 = vmatpush.xpose.msk.msra.mxu1 %vm63_vm0, %v62_v2  ;;  %v60_v5 = vmul.f32 14.285714, %v58_v4  ;;  %49 = vst.msk [vmem:[#allocation2] sm:$0xff] %vm48_vm1, %v410_v6  ;;  %v118_v8 = vshrl.u32 %v117_v7, 7  ;;  %v437_v9 = vand.u32 127, %v117_v7  ;;  %v411_v21 = vmov 0.0  }
   0xf   :  { %50 = vst.msk [vmem:[#allocation2 + $0x8] sm:$0xff] %vm48_vm1, %v410_v6  ;;  %v412_v22 = vmov 0   ;;  %s413_s0 = smov [#allocation11]   ;;  %s282_s23 = sshll.u32 %s469_s2, 4  ;;  %vm270_vm4 = vcmask 1041409   ;;  %vm273_vm5 = vcmask 58368   ;;  %s283_s23 = int_to_ptr.hbm [resolvable:$true] %s282_s23 }
  0x10   :  { %294 = vmatmul.msk.f32.vlgmr.msra.gmra.mxu0 %vm63_vm0, %v59_v3  ;;  %vm126_vm2 = vcmp.eq.s32.totalorder %v118_v8, %v437_v9  ;;  %55 = vst.msk [vmem:[#allocation5] sm:$0xff] %vm48_vm1, %v411_v21  ;;  %305 = vset.pattern.permute.xlu1 %v412_v22  ;;  %s280_s1 = sshll.u32 %s413_s0, 4  ;;  %s281_s1 = int_to_ptr.vmem [resolvable:$true] %s280_s1 }
  0x11   :  { %296 = vmatmul.msk.f32.vlgmr.msra.gmra.mxu1 %vm63_vm0, %v60_v5  ;;  %51 = vst.msk [vmem:[#allocation3] sm:$0xff] %vm48_vm1, %v411_v21  ;;  %306 = vset.pattern.permute.xlu2 %v412_v22 }
  0x12   :  { %52 = vst.msk [vmem:[#allocation3 + $0x8] sm:$0xff] %vm48_vm1, %v411_v21  ;;  %307 = vset.pattern.permute.xlu0 %v412_v22 }
  0x13   :  { %53 = vst.msk [vmem:[#allocation4] sm:$0xff] %vm48_vm1, %v411_v21 }
  0x14   :  { %54 = vst.msk [vmem:[#allocation4 + $0x8] sm:$0xff] %vm48_vm1, %v411_v21 }
  0x15   :  { %56 = vst.msk [vmem:[#allocation5 + $0x8] sm:$0xff] %vm48_vm1, %v411_v21  ;;  %v147_v23 = vld [vmem:[#allocation2] sm:$0xff] }
  0x16   :  { %v148_v30 = vld [vmem:[#allocation2 + $0x8] sm:$0xff] }
  0x17   :  { %v127_v24 = vld [vmem:[#allocation5] sm:$0xff] }
  0x18   :  { %v173_v57 = vld [vmem:[#allocation3] sm:$0xff] }
  0x19   :  { %v174_v5 = vld [vmem:[#allocation3 + $0x8] sm:$0xff] }
  0x1a   :  { %v193_v37 = vld [vmem:[#allocation4] sm:$0xff] }
  0x1b   :  { %v194_v7 = vld [vmem:[#allocation4 + $0x8] sm:$0xff] }
  0x1c   :  { %v128_v31 = vld [vmem:[#allocation5 + $0x8] sm:$0xff] }
  0x8d   :  { %v87_v10 = vpop.f32.mrf.mxu0 }
  0x8e   :  { %v131_v11 = vsel %vm126_vm2, %v87_v10, 0.0  ;;  %v145_v12 = vsel %vm126_vm2, -142.85715, %v87_v10  ;;  %v113_v15 = vpop.f32.mrf.mxu1 }
  0x8f   :  { %v149_v13 = vsel %vm133_vm3, %v145_v12, -inf  ;;  %v134_v14 = vsel %vm133_vm3, %v131_v11, 0.0  ;;  %v132_v16 = vsel %vm126_vm2, %v113_v15, 0.0  ;;  %v146_v17 = vsel %vm126_vm2, -142.85715, %v113_v15 }
  0x90   :  { %150 = vmax.xlane.f32.xlu0 %v149_v13  ;;  %135 = vadd.xlane.f32.xlu2 %v134_v14  ;;  %v152_v18 = vsel %vm133_vm3, %v146_v17, -inf  ;;  %v137_v19 = vsel %vm133_vm3, %v132_v16, 0.0  ;;  %v195_v20 = vsel %vm133_vm3, %v145_v12, 0.0  ;;  %v198_v49 = vsel %vm133_vm3, %v146_v17, 0.0 }
  0x98   :  { %153 = vmax.xlane.f32.xlu0 %v152_v18  ;;  %138 = vadd.xlane.f32.xlu2 %v137_v19 }
  0xa0   :  { %196 = vadd.xlane.f32.xlu2 %v195_v20 }
 0x103   :  { %v151_v25 = vpop.xlane.xlu0 %150  ;;  %v136_v26 = vpop.xlane.xlu2 %135 }
 0x104   :  { %v155_v27 = vmax.f32 %v147_v23, %v151_v25  ;;  %v140_v28 = vadd.f32 %v136_v26, %v127_v24 }
 0x106   :  { %v175_v29 = vsub.f32 %v147_v23, %v155_v27  ;;  %205 = vst.msk [vmem:[#allocation2] sm:$0xff] %vm48_vm1, %v155_v27  ;;  %159 = vperm.xlu1 %305, %v155_v27  }
 0x107   :  { %143 = vst.msk [vmem:[#allocation5] sm:$0xff] %vm48_vm1, %v140_v28 }
 0x108   :  { %v177_v51 = vmul.f32 1.442695, %v175_v29 }
 0x10b   :  { %v154_v32 = vpop.xlane.xlu0 %153  ;;  %v139_v33 = vpop.xlane.xlu2 %138 }
 0x10c   :  { %v156_v34 = vmax.f32 %v148_v30, %v154_v32  ;;  %v141_v35 = vadd.f32 %v139_v33, %v128_v31 }
 0x10d   :  { %v212_v53 = vld [vmem:[#allocation2] sm:$0xff] }
 0x10e   :  { %v176_v36 = vsub.f32 %v148_v30, %v156_v34  ;;  %206 = vst.msk [vmem:[#allocation2 + $0x8] sm:$0xff] %vm48_vm1, %v156_v34  ;;  %164 = vperm.xlu1 %305, %v156_v34   ;;  %v210_v52 = vld [vmem:[#allocation5] sm:$0xff] }
 0x10f   :  { %144 = vst.msk [vmem:[#allocation5 + $0x8] sm:$0xff] %vm48_vm1, %v141_v35  ;;  %v214_v54 = vmax.f32 %v212_v53, %v210_v52 }
 0x110   :  { %v179_v55 = vmul.f32 1.442695, %v176_v36 }
 0x111   :  { %v218_v58 = vsub.f32 %v212_v53, %v214_v54  ;;  %v226_v59 = vsub.f32 %v210_v52, %v214_v54 }
 0x113   :  { %v197_v38 = vpop.xlane.xlu2 %196  ;;  %v220_v0 = vmul.f32 1.442695, %v218_v58  ;;  %v228_v3 = vmul.f32 1.442695, %v226_v59 }
 0x114   :  { %v201_v39 = vadd.f32 %v197_v38, %v193_v37 }
 0x115   :  { %v213_v61 = vld [vmem:[#allocation2 + $0x8] sm:$0xff] }
 0x116   :  { %203 = vst.msk [vmem:[#allocation4] sm:$0xff] %vm48_vm1, %v201_v39  ;;  %v211_v60 = vld [vmem:[#allocation5 + $0x8] sm:$0xff] }
 0x117   :  { %v215_v2 = vmax.f32 %v213_v61, %v211_v60 }
 0x119   :  { %v219_v6 = vsub.f32 %v213_v61, %v215_v2  ;;  %v227_v8 = vsub.f32 %v211_v60, %v215_v2 }
 0x11b   :  { %v222_v15 = vmul.f32 1.442695, %v219_v6  ;;  %v230_v18 = vmul.f32 1.442695, %v227_v8 }
 0x11d   :  { %v242_v29 = vld [vmem:[#allocation4] sm:$0xff] }
 0x11e   :  { %v244_v31 = vadd.f32 %v242_v29, %v210_v52 }
 0x178   :  { %v160_v40 = vpop.permute.xlu1 %159 }
 0x179   :  { %v167_v41 = vsub.f32 %v145_v12, %v160_v40 }
 0x17b   :  { %v169_v42 = vmul.f32 1.442695, %v167_v41 }
 0x17d   :  { %308 = vpow2.f32 %v169_v42 }
 0x180   :  { %v165_v43 = vpop.permute.xlu1 %164 }
 0x181   :  { %v168_v44 = vsub.f32 %v146_v17, %v165_v43 }
 0x183   :  { %v309_v45 = vpop.eup %308  ;;  %v171_v46 = vmul.f32 1.442695, %v168_v44 }
 0x184   :  { %v183_v47 = vsel %vm133_vm3, %v309_v45, 0.0 }
 0x185   :  { %310 = vpow2.f32 %v171_v46  ;;  %184 = vadd.xlane.f32.xlu0 %v183_v47 }
 0x186   :  { %312 = vpow2.f32 %v177_v51 }
 0x187   :  { %314 = vpow2.f32 %v179_v55 }
 0x188   :  { %316 = vpow2.f32 %v220_v0 }
 0x189   :  { %318 = vpow2.f32 %v228_v3 }
 0x18a   :  { %320 = vpow2.f32 %v222_v15 }
 0x18b   :  { %v311_v48 = vpop.eup %310  ;;  %322 = vpow2.f32 %v230_v18 }
 0x18c   :  { %v186_v50 = vsel %vm133_vm3, %v311_v48, 0.0  ;;  %v313_v56 = vpop.eup %312 }
 0x18d   :  { %199 = vadd.xlane.f32.xlu0 %v198_v49  ;;  %187 = vadd.xlane.f32.xlu1 %v186_v50  ;;  %v181_v62 = vmul.f32 %v313_v56, %v173_v57  ;;  %v315_v4 = vpop.eup %314 }
 0x18e   :  { %v182_v10 = vmul.f32 %v315_v4, %v174_v5  ;;  %v317_v16 = vpop.eup %316 }
 0x18f   :  { %v319_v20 = vpop.eup %318 }
 0x190   :  { %v321_v22 = vpop.eup %320 }
 0x191   :  { %v323_v24 = vpop.eup %322 }
 0x1f8   :  { %v185_v63 = vpop.xlane.xlu0 %184 }
 0x1f9   :  { %v189_v1 = vadd.f32 %v185_v63, %v181_v62 }
 0x1fb   :  { %191 = vst.msk [vmem:[#allocation3] sm:$0xff] %vm48_vm1, %v189_v1 }
 0x200   :  { %v200_v11 = vpop.xlane.xlu0 %199  ;;  %v188_v12 = vpop.xlane.xlu1 %187 }
 0x201   :  { %v202_v13 = vadd.f32 %v200_v11, %v194_v7  ;;  %v190_v14 = vadd.f32 %v188_v12, %v182_v10 }
 0x202   :  { %v216_v17 = vld [vmem:[#allocation3] sm:$0xff] }
 0x203   :  { %204 = vst.msk [vmem:[#allocation4 + $0x8] sm:$0xff] %vm48_vm1, %v202_v13  ;;  %v224_v19 = vmul.f32 %v317_v16, %v216_v17 }
 0x204   :  { %192 = vst.msk [vmem:[#allocation3 + $0x8] sm:$0xff] %vm48_vm1, %v190_v14 }
 0x205   :  { %v232_v21 = vadd.f32 %v319_v20, %v224_v19 }
 0x207   :  { %324 = vlog2.f32 %v232_v21 }
 0x20a   :  { %v243_v40 = vld [vmem:[#allocation4 + $0x8] sm:$0xff] }
 0x20b   :  { %v217_v23 = vld [vmem:[#allocation3 + $0x8] sm:$0xff]  ;;  %v245_v43 = vadd.f32 %v243_v40, %v211_v60 }
 0x20c   :  { %v225_v25 = vmul.f32 %v321_v22, %v217_v23 }
 0x20d   :  { %v325_v26 = vpop.eup %324 }
 0x20e   :  { %v235_v27 = vmul.f32 0.6931472, %v325_v26  ;;  %v233_v28 = vadd.f32 %v323_v24, %v225_v25 }
 0x210   :  { %v238_v30 = vadd.f32 %v235_v27, %v214_v54  ;;  %326 = vlog2.f32 %v233_v28 }
 0x212   :  { %v246_v32 = vmul.f32 9.0, %v238_v30  ;;  %v240_v33 = vsub.f32 %v210_v52, %v238_v30 }
 0x214   :  { %v248_v34 = vsub.f32 %v244_v31, %v246_v32  ;;  %v250_v38 = vmul.f32 0.9, %v240_v33 }
 0x216   :  { %v327_v35 = vpop.eup %326  ;;  %v252_v36 = vsub.f32 %v248_v34, %v240_v33 }
 0x217   :  { %v237_v37 = vmul.f32 0.6931472, %v327_v35 }
 0x218   :  { %v254_v39 = vmul.f32 0.011111111, %v252_v36 }
 0x219   :  { %v239_v41 = vadd.f32 %v237_v37, %v215_v2 }
 0x21a   :  { %v256_v42 = vadd.f32 %v254_v39, %v250_v38 }
 0x21b   :  { %v247_v44 = vmul.f32 9.0, %v239_v41  ;;  %v241_v46 = vsub.f32 %v211_v60, %v239_v41 }
 0x21c   :  { %v258_v45 = vsub.f32 0.0, %v256_v42 }
 0x21d   :  { %v249_v47 = vsub.f32 %v245_v43, %v247_v44  ;;  %v251_v49 = vmul.f32 0.9, %v241_v46 }
 0x21e   :  { %263 = vperm.xlu2 %306, %v258_v45  }
 0x21f   :  { %v253_v48 = vsub.f32 %v249_v47, %v241_v46 }
 0x221   :  { %v255_v50 = vmul.f32 0.011111111, %v253_v48 }
 0x223   :  { %v257_v51 = vadd.f32 %v255_v50, %v251_v49 }
 0x225   :  { %v259_v52 = vsub.f32 0.0, %v257_v51 }
 0x227   :  { %266 = vperm.xlu0 %307, %v259_v52  }
 0x278   :  { %v264_v53 = vpop.permute.xlu2 %263 }
 0x279   :  { %v268_v55 = vperm.slane %v264_v53, %v437_v9 }
 0x299   :  { %v267_v54 = vpop.permute.xlu0 %266 }
 0x29a   :  { %v269_v56 = vperm.slane %v267_v54, %v437_v9 }
 0x29c   :  { %v271_v57 = vsel %vm270_vm4, %v269_v56, %v268_v55 }
 0x29d   :  { %274 = vst.msk [vmem:[#allocation11] sm:$0x3] %vm273_vm5, %v271_v57 }
 0x29e   :  { %285 = dma.vmem_to_hbm [thread:$0]  %s281_s1, 32, %s283_s23, [#allocation8]  }
 0x29f   :  { %404 = dma.done.wait [#allocation8], 32  }
 0x2a0   :  { %405 = vsyncadd [#allocation8], 4294967264 }
 0x2a1   :  { %290 = vsyncpa [#allocation7], 1 }
 0x2a2   :  { %291 = vsyncpa [#allocation10], 1 }
 0x2a3   :  { %292 = vsyncpa [#allocation8], 1 }

</bundles_post_ra>
